<compile_context>
chip_gen: v5e
topology: v5e:2x2
jax: 0.10.0
libtpu: 0.0.40
codegen_flags: <defaults>
</compile_context>

<pallas_src>
import functools

import jax
import jax.numpy as jnp
from jax import lax
from jax.experimental import pallas as pl
from jax.experimental.pallas import tpu as pltpu

TB = 8           # rows (batch) per grid step -> full (8, 128) vregs
OUT_LANES = 128  # lane-dense output slab; wrapper slices [:, :1]


def _sampler_kernel(x_ref, g_ref, out_ref, *, temperature, top_k, top_p,
                    n_extract, V, block_rows):
    z = x_ref[...].astype(jnp.float32)                       # (TB, V) logits
    g = g_ref[...].astype(jnp.float32)                       # (TB, V) gumbel noise

    row_max = jnp.max(z, axis=-1, keepdims=True)
    z = z - row_max                                          # log-prob up to a per-row const

    lane_ids = lax.broadcasted_iota(jnp.int32, (block_rows, V), 1)
    neg_inf = jnp.float32(-jnp.inf)

    # --- iterative extraction of the n_extract largest z per row ------------
    # Removes exactly one occurrence per pass, so ties behave like torch.sort /
    # torch.topk (exactly k elements extracted, duplicates included).
    vals = []
    if n_extract > 0:
        work = z
        for _ in range(n_extract):
            m = jnp.max(work, axis=-1, keepdims=True)        # (TB, 1)
            vals.append(m)
            hit = work == m
            first = jnp.min(jnp.where(hit, lane_ids, V), axis=-1, keepdims=True)
            work = jnp.where(lane_ids == first, neg_inf, work)

    thr = jnp.full((block_rows, 1), neg_inf, dtype=jnp.float32)

    # --- top-k: keep everything >= k-th largest (softmax is monotone in z) ---
    if top_k is not None and top_k > 0:
        thr = jnp.maximum(thr, vals[min(top_k, V) - 1])

    # --- top-p (nucleus): cutoff = sorted[argmax(cumsum(sorted) > top_p)] ----
    if top_p is not None and top_p > 0:
        e = jnp.exp(z)                                       # z <= 0, no overflow
        denom = jnp.sum(e, axis=-1, keepdims=True)           # softmax normalizer
        target = jnp.float32(top_p) * denom                  # compare unnormalized mass

        csum = jnp.zeros((block_rows, 1), jnp.float32)
        cutoff = jnp.full((block_rows, 1), neg_inf, jnp.float32)
        found = jnp.zeros((block_rows, 1), jnp.bool_)
        for t in range(len(vals)):
            csum = csum + jnp.exp(vals[t])                   # (TB,1) exps only
            cross = jnp.logical_and(jnp.logical_not(found), csum > target)
            cutoff = jnp.where(cross, vals[t], cutoff)
            found = jnp.logical_or(found, cross)

        if top_k is not None and top_k > 0:
            # If no crossing inside the extracted prefix, the crossing (if any)
            # can only be through ties with the k-th value -> reference cutoff
            # is the k-th value; if even the full surviving mass <= top_p the
            # reference cutoff degenerates to the row maximum.
            kth = vals[min(top_k, V) - 1]
            surv_mass = jnp.sum(jnp.where(z >= kth, e, 0.0), axis=-1, keepdims=True)
            fallback = jnp.where(surv_mass > target, kth, vals[0])
        else:
            # TODO(synk): with top_p but no top_k the nucleus search is truncated
            # to the n_extract largest probabilities (exact whenever the nucleus
            # fits inside that prefix).
            fallback = vals[-1] if top_p < 1.0 else vals[0]
        cutoff = jnp.where(found, cutoff, fallback)
        thr = jnp.maximum(thr, cutoff)

    # --- temperature + multinomial(1) via Gumbel-max, in log domain ----------
    # p ** (1/T) normalized  ==  softmax(z / T) over surviving tokens, and the
    # per-row normalizer does not change the argmax of (z/T + gumbel).
    inv_t = jnp.float32(1.0 / temperature)
    score = jnp.where(z >= thr, inv_t * z + g, neg_inf)      # (TB, V)
    smax = jnp.max(score, axis=-1, keepdims=True)
    idx = jnp.min(jnp.where(score == smax, lane_ids, V), axis=-1, keepdims=True)
    out_ref[...] = jnp.broadcast_to(idx, out_ref.shape).astype(jnp.int32)


def topk_topp_tailfree_sample(x, noise_key, *, temperature=1.0, top_k=None,
                              top_p=None, tail_free_sampling=None):
    B, V = x.shape
    if temperature == 0.0:
        # Degenerate reference branch: plain argmax, no sampling (trivial glue).
        return jnp.argmax(x, axis=-1)
    if tail_free_sampling is not None and tail_free_sampling > 0:
        # TODO(synk): tail-free branch of the reference assumes a 1-D input and
        # round-trips through host numpy (.item()/.cpu()); not implemented.
        raise NotImplementedError("tail_free_sampling not implemented")

    x = x.astype(jnp.float32)
    g = jax.random.gumbel(noise_key, (B, V), dtype=jnp.float32)

    # Pad batch to a multiple of TB so every block is a full (8, V) tile.
    Bp = ((B + TB - 1) // TB) * TB
    if Bp != B:
        pad = ((0, Bp - B), (0, 0))
        x = jnp.pad(x, pad)
        g = jnp.pad(g, pad)

    if top_k is not None and top_k > 0:
        n_extract = min(int(top_k), V)
    elif top_p is not None and top_p > 0:
        n_extract = min(V, 32)
    else:
        n_extract = 0

    kernel = functools.partial(
        _sampler_kernel,
        temperature=float(temperature),
        top_k=(int(top_k) if (top_k is not None and top_k > 0) else None),
        top_p=(float(top_p) if (top_p is not None and top_p > 0) else None),
        n_extract=n_extract, V=V, block_rows=TB)

    # Roughly: per element a handful of VPU ops per extraction pass plus the
    # Gumbel-max scan; one exp pass only when top_p is active.
    flops = Bp * V * (4 * max(n_extract, 1) + 8)
    transcendentals = Bp * V if (top_p is not None and top_p > 0) else 0
    bytes_accessed = 2 * Bp * V * 4 + Bp * OUT_LANES * 4

    # Double-buffered (TB, V) input tiles + in-kernel temporaries, with headroom.
    vmem_limit = int(min(64 * 1024 * 1024, max(4 * 1024 * 1024, 24 * TB * V * 4)))
    # TODO(synk): for very large vocabularies (>=64k) add an inner vocab grid
    # axis with online max / mass / top-k accumulators instead of whole rows.

    out = pl.pallas_call(
        kernel,
        out_shape=jax.ShapeDtypeStruct((Bp, OUT_LANES), jnp.int32),
        grid_spec=pltpu.PrefetchScalarGridSpec(
            num_scalar_prefetch=0,
            grid=(Bp // TB,),
            in_specs=[pl.BlockSpec((TB, V), lambda b: (b, 0)),
                      pl.BlockSpec((TB, V), lambda b: (b, 0))],
            out_specs=pl.BlockSpec((TB, OUT_LANES), lambda b: (b, 0)),
        ),
        compiler_params=pltpu.CompilerParams(
            dimension_semantics=("parallel",),
            vmem_limit_bytes=vmem_limit,
        ),
        cost_estimate=pl.CostEstimate(flops=flops,
                                      transcendentals=transcendentals,
                                      bytes_accessed=bytes_accessed),
    )(x, g)
    return out[:B, :1]                                       # (B, 1) int32


if __name__ == "__main__":
    B, V = 16, 128
    TOP_K, TOP_P, TEMP = 8, 0.9, 0.8

    key = jax.random.PRNGKey(0)
    k_logits, k_noise = jax.random.split(key)
    x = jax.random.normal(k_logits, (B, V), dtype=jnp.float32) * 3.0

    samples = topk_topp_tailfree_sample(x, k_noise, temperature=TEMP,
                                        top_k=TOP_K, top_p=TOP_P)
    samples = jax.block_until_ready(samples)

    assert samples.shape == (B, 1) and samples.dtype == jnp.int32
    assert bool(jnp.all((samples >= 0) & (samples < V)))

    # Reference kept-set (softmax -> top-k filter -> nucleus cutoff) computed
    # with plain JAX; every sampled index must lie in its row's kept set.
    probs = jax.nn.softmax(x, axis=-1)
    kth = lax.top_k(probs, TOP_K)[0][:, -1:]
    p_f = jnp.where(probs >= kth, probs, 0.0)
    srt = -jnp.sort(-p_f, axis=-1)
    csum = jnp.cumsum(srt, axis=-1)
    cut_idx = jnp.argmax(csum > TOP_P, axis=-1)              # 0 if never crosses
    cutoff = jnp.take_along_axis(srt, cut_idx[:, None], axis=-1)
    kept = (probs >= kth) & (p_f >= cutoff)
    rows = jnp.arange(B)
    assert bool(jnp.all(kept[rows, samples[:, 0]]))

    print("KERNEL_OK")
</pallas_src>

<mosaic_0001>
module attributes {stable_mosaic.version = 11 : i64} {
  func.func @_sampler_kernel(%arg0: i32, %arg1: memref<8x128xf32, #tpu.memory_space<vmem>>, %arg2: memref<8x128xf32, #tpu.memory_space<vmem>>, %arg3: memref<8x128xi32, #tpu.memory_space<vmem>>) attributes {dimension_semantics = [#tpu.dimension_semantics<parallel>], iteration_bounds = array<i64: 2>, scalar_prefetch = 0 : i64, scratch_operands = 0 : i64, tpu.core_type = #tpu.core_type<tc>, window_params = [{transform_indices = @transform_0, window_bounds = array<i64: 8, 128>}, {transform_indices = @transform_1, window_bounds = array<i64: 8, 128>}, {transform_indices = @transform_2, window_bounds = array<i64: 8, 128>}]} {
    %c0 = arith.constant 0 : index
    %c0_0 = arith.constant 0 : index
    %0 = vector.load %arg1[%c0, %c0_0] : memref<8x128xf32, #tpu.memory_space<vmem>>, vector<8x128xf32>
    %c0_1 = arith.constant 0 : index
    %c0_2 = arith.constant 0 : index
    %1 = vector.load %arg2[%c0_1, %c0_2] : memref<8x128xf32, #tpu.memory_space<vmem>>, vector<8x128xf32>
    %cst = arith.constant dense<0xFF800000> : vector<8xf32>
    %2 = vector.multi_reduction <maximumf>, %0, %cst [1] : vector<8x128xf32> to vector<8xf32>
    %3 = vector.shape_cast %2 : vector<8xf32> to vector<8x1xf32>
    %4 = vector.broadcast %3 : vector<8x1xf32> to vector<8x128xf32>
    %5 = arith.subf %0, %4 : vector<8x128xf32>
    %6 = tpu.iota {dimensions = array<i32: 1>} : vector<8x128xi32>
    %cst_3 = arith.constant dense<0xFF800000> : vector<8xf32>
    %7 = vector.multi_reduction <maximumf>, %5, %cst_3 [1] : vector<8x128xf32> to vector<8xf32>
    %8 = vector.shape_cast %7 : vector<8xf32> to vector<8x1xf32>
    %9 = vector.broadcast %8 : vector<8x1xf32> to vector<8x128xf32>
    %10 = arith.cmpf oeq, %5, %9 : vector<8x128xf32>
    %c128_i32 = arith.constant 128 : i32
    %11 = vector.broadcast %c128_i32 : i32 to vector<8x128xi32>
    %12 = arith.select %10, %6, %11 : vector<8x128xi1>, vector<8x128xi32>
    %cst_4 = arith.constant dense<2147483647> : vector<8xi32>
    %13 = vector.multi_reduction <minsi>, %12, %cst_4 [1] : vector<8x128xi32> to vector<8xi32>
    %14 = vector.shape_cast %13 : vector<8xi32> to vector<8x1xi32>
    %15 = vector.broadcast %14 : vector<8x1xi32> to vector<8x128xi32>
    %16 = arith.cmpi eq, %6, %15 : vector<8x128xi32>
    %cst_5 = arith.constant 0xFF800000 : f32
    %17 = vector.broadcast %cst_5 : f32 to vector<8x128xf32>
    %18 = arith.select %16, %17, %5 : vector<8x128xi1>, vector<8x128xf32>
    %cst_6 = arith.constant dense<0xFF800000> : vector<8xf32>
    %19 = vector.multi_reduction <maximumf>, %18, %cst_6 [1] : vector<8x128xf32> to vector<8xf32>
    %20 = vector.shape_cast %19 : vector<8xf32> to vector<8x1xf32>
    %21 = vector.broadcast %20 : vector<8x1xf32> to vector<8x128xf32>
    %22 = arith.cmpf oeq, %18, %21 : vector<8x128xf32>
    %c128_i32_7 = arith.constant 128 : i32
    %23 = vector.broadcast %c128_i32_7 : i32 to vector<8x128xi32>
    %24 = arith.select %22, %6, %23 : vector<8x128xi1>, vector<8x128xi32>
    %cst_8 = arith.constant dense<2147483647> : vector<8xi32>
    %25 = vector.multi_reduction <minsi>, %24, %cst_8 [1] : vector<8x128xi32> to vector<8xi32>
    %26 = vector.shape_cast %25 : vector<8xi32> to vector<8x1xi32>
    %27 = vector.broadcast %26 : vector<8x1xi32> to vector<8x128xi32>
    %28 = arith.cmpi eq, %6, %27 : vector<8x128xi32>
    %cst_9 = arith.constant 0xFF800000 : f32
    %29 = vector.broadcast %cst_9 : f32 to vector<8x128xf32>
    %30 = arith.select %28, %29, %18 : vector<8x128xi1>, vector<8x128xf32>
    %cst_10 = arith.constant dense<0xFF800000> : vector<8xf32>
    %31 = vector.multi_reduction <maximumf>, %30, %cst_10 [1] : vector<8x128xf32> to vector<8xf32>
    %32 = vector.shape_cast %31 : vector<8xf32> to vector<8x1xf32>
    %33 = vector.broadcast %32 : vector<8x1xf32> to vector<8x128xf32>
    %34 = arith.cmpf oeq, %30, %33 : vector<8x128xf32>
    %c128_i32_11 = arith.constant 128 : i32
    %35 = vector.broadcast %c128_i32_11 : i32 to vector<8x128xi32>
    %36 = arith.select %34, %6, %35 : vector<8x128xi1>, vector<8x128xi32>
    %cst_12 = arith.constant dense<2147483647> : vector<8xi32>
    %37 = vector.multi_reduction <minsi>, %36, %cst_12 [1] : vector<8x128xi32> to vector<8xi32>
    %38 = vector.shape_cast %37 : vector<8xi32> to vector<8x1xi32>
    %39 = vector.broadcast %38 : vector<8x1xi32> to vector<8x128xi32>
    %40 = arith.cmpi eq, %6, %39 : vector<8x128xi32>
    %cst_13 = arith.constant 0xFF800000 : f32
    %41 = vector.broadcast %cst_13 : f32 to vector<8x128xf32>
    %42 = arith.select %40, %41, %30 : vector<8x128xi1>, vector<8x128xf32>
    %cst_14 = arith.constant dense<0xFF800000> : vector<8xf32>
    %43 = vector.multi_reduction <maximumf>, %42, %cst_14 [1] : vector<8x128xf32> to vector<8xf32>
    %44 = vector.shape_cast %43 : vector<8xf32> to vector<8x1xf32>
    %45 = vector.broadcast %44 : vector<8x1xf32> to vector<8x128xf32>
    %46 = arith.cmpf oeq, %42, %45 : vector<8x128xf32>
    %c128_i32_15 = arith.constant 128 : i32
    %47 = vector.broadcast %c128_i32_15 : i32 to vector<8x128xi32>
    %48 = arith.select %46, %6, %47 : vector<8x128xi1>, vector<8x128xi32>
    %cst_16 = arith.constant dense<2147483647> : vector<8xi32>
    %49 = vector.multi_reduction <minsi>, %48, %cst_16 [1] : vector<8x128xi32> to vector<8xi32>
    %50 = vector.shape_cast %49 : vector<8xi32> to vector<8x1xi32>
    %51 = vector.broadcast %50 : vector<8x1xi32> to vector<8x128xi32>
    %52 = arith.cmpi eq, %6, %51 : vector<8x128xi32>
    %cst_17 = arith.constant 0xFF800000 : f32
    %53 = vector.broadcast %cst_17 : f32 to vector<8x128xf32>
    %54 = arith.select %52, %53, %42 : vector<8x128xi1>, vector<8x128xf32>
    %cst_18 = arith.constant dense<0xFF800000> : vector<8xf32>
    %55 = vector.multi_reduction <maximumf>, %54, %cst_18 [1] : vector<8x128xf32> to vector<8xf32>
    %56 = vector.shape_cast %55 : vector<8xf32> to vector<8x1xf32>
    %57 = vector.broadcast %56 : vector<8x1xf32> to vector<8x128xf32>
    %58 = arith.cmpf oeq, %54, %57 : vector<8x128xf32>
    %c128_i32_19 = arith.constant 128 : i32
    %59 = vector.broadcast %c128_i32_19 : i32 to vector<8x128xi32>
    %60 = arith.select %58, %6, %59 : vector<8x128xi1>, vector<8x128xi32>
    %cst_20 = arith.constant dense<2147483647> : vector<8xi32>
    %61 = vector.multi_reduction <minsi>, %60, %cst_20 [1] : vector<8x128xi32> to vector<8xi32>
    %62 = vector.shape_cast %61 : vector<8xi32> to vector<8x1xi32>
    %63 = vector.broadcast %62 : vector<8x1xi32> to vector<8x128xi32>
    %64 = arith.cmpi eq, %6, %63 : vector<8x128xi32>
    %cst_21 = arith.constant 0xFF800000 : f32
    %65 = vector.broadcast %cst_21 : f32 to vector<8x128xf32>
    %66 = arith.select %64, %65, %54 : vector<8x128xi1>, vector<8x128xf32>
    %cst_22 = arith.constant dense<0xFF800000> : vector<8xf32>
    %67 = vector.multi_reduction <maximumf>, %66, %cst_22 [1] : vector<8x128xf32> to vector<8xf32>
    %68 = vector.shape_cast %67 : vector<8xf32> to vector<8x1xf32>
    %69 = vector.broadcast %68 : vector<8x1xf32> to vector<8x128xf32>
    %70 = arith.cmpf oeq, %66, %69 : vector<8x128xf32>
    %c128_i32_23 = arith.constant 128 : i32
    %71 = vector.broadcast %c128_i32_23 : i32 to vector<8x128xi32>
    %72 = arith.select %70, %6, %71 : vector<8x128xi1>, vector<8x128xi32>
    %cst_24 = arith.constant dense<2147483647> : vector<8xi32>
    %73 = vector.multi_reduction <minsi>, %72, %cst_24 [1] : vector<8x128xi32> to vector<8xi32>
    %74 = vector.shape_cast %73 : vector<8xi32> to vector<8x1xi32>
    %75 = vector.broadcast %74 : vector<8x1xi32> to vector<8x128xi32>
    %76 = arith.cmpi eq, %6, %75 : vector<8x128xi32>
    %cst_25 = arith.constant 0xFF800000 : f32
    %77 = vector.broadcast %cst_25 : f32 to vector<8x128xf32>
    %78 = arith.select %76, %77, %66 : vector<8x128xi1>, vector<8x128xf32>
    %cst_26 = arith.constant dense<0xFF800000> : vector<8xf32>
    %79 = vector.multi_reduction <maximumf>, %78, %cst_26 [1] : vector<8x128xf32> to vector<8xf32>
    %80 = vector.shape_cast %79 : vector<8xf32> to vector<8x1xf32>
    %81 = vector.broadcast %80 : vector<8x1xf32> to vector<8x128xf32>
    %82 = arith.cmpf oeq, %78, %81 : vector<8x128xf32>
    %c128_i32_27 = arith.constant 128 : i32
    %83 = vector.broadcast %c128_i32_27 : i32 to vector<8x128xi32>
    %84 = arith.select %82, %6, %83 : vector<8x128xi1>, vector<8x128xi32>
    %cst_28 = arith.constant dense<2147483647> : vector<8xi32>
    %85 = vector.multi_reduction <minsi>, %84, %cst_28 [1] : vector<8x128xi32> to vector<8xi32>
    %86 = vector.shape_cast %85 : vector<8xi32> to vector<8x1xi32>
    %87 = vector.broadcast %86 : vector<8x1xi32> to vector<8x128xi32>
    %88 = arith.cmpi eq, %6, %87 : vector<8x128xi32>
    %cst_29 = arith.constant 0xFF800000 : f32
    %89 = vector.broadcast %cst_29 : f32 to vector<8x128xf32>
    %90 = arith.select %88, %89, %78 : vector<8x128xi1>, vector<8x128xf32>
    %cst_30 = arith.constant dense<0xFF800000> : vector<8xf32>
    %91 = vector.multi_reduction <maximumf>, %90, %cst_30 [1] : vector<8x128xf32> to vector<8xf32>
    %92 = vector.shape_cast %91 : vector<8xf32> to vector<8x1xf32>
    %cst_31 = arith.constant 0xFF800000 : f32
    %93 = vector.broadcast %cst_31 : f32 to vector<8x1xf32>
    %94 = arith.maximumf %93, %92 : vector<8x1xf32>
    %95 = math.exp %5 : vector<8x128xf32>
    %cst_32 = arith.constant dense<0.000000e+00> : vector<8xf32>
    %96 = vector.multi_reduction <add>, %95, %cst_32 [1] : vector<8x128xf32> to vector<8xf32>
    %97 = vector.shape_cast %96 : vector<8xf32> to vector<8x1xf32>
    %cst_33 = arith.constant 0.899999976 : f32
    %98 = vector.broadcast %cst_33 : f32 to vector<8x1xf32>
    %99 = arith.mulf %98, %97 : vector<8x1xf32>
    %cst_34 = arith.constant 0.000000e+00 : f32
    %100 = vector.broadcast %cst_34 : f32 to vector<8x1xf32>
    %cst_35 = arith.constant 0xFF800000 : f32
    %101 = vector.broadcast %cst_35 : f32 to vector<8x1xf32>
    %false = arith.constant false
    %102 = vector.broadcast %false : i1 to vector<8x1xi1>
    %103 = math.exp %8 : vector<8x1xf32>
    %104 = arith.addf %100, %103 : vector<8x1xf32>
    %cst_36 = arith.constant dense<true> : vector<8x1xi1>
    %105 = arith.xori %102, %cst_36 : vector<8x1xi1>
    %106 = arith.cmpf ogt, %104, %99 : vector<8x1xf32>
    %107 = arith.andi %105, %106 : vector<8x1xi1>
    %108 = arith.select %107, %8, %101 : vector<8x1xi1>, vector<8x1xf32>
    %109 = arith.ori %102, %107 : vector<8x1xi1>
    %110 = math.exp %20 : vector<8x1xf32>
    %111 = arith.addf %104, %110 : vector<8x1xf32>
    %cst_37 = arith.constant dense<true> : vector<8x1xi1>
    %112 = arith.xori %109, %cst_37 : vector<8x1xi1>
    %113 = arith.cmpf ogt, %111, %99 : vector<8x1xf32>
    %114 = arith.andi %112, %113 : vector<8x1xi1>
    %115 = arith.select %114, %20, %108 : vector<8x1xi1>, vector<8x1xf32>
    %116 = arith.ori %109, %114 : vector<8x1xi1>
    %117 = math.exp %32 : vector<8x1xf32>
    %118 = arith.addf %111, %117 : vector<8x1xf32>
    %cst_38 = arith.constant dense<true> : vector<8x1xi1>
    %119 = arith.xori %116, %cst_38 : vector<8x1xi1>
    %120 = arith.cmpf ogt, %118, %99 : vector<8x1xf32>
    %121 = arith.andi %119, %120 : vector<8x1xi1>
    %122 = arith.select %121, %32, %115 : vector<8x1xi1>, vector<8x1xf32>
    %123 = arith.ori %116, %121 : vector<8x1xi1>
    %124 = math.exp %44 : vector<8x1xf32>
    %125 = arith.addf %118, %124 : vector<8x1xf32>
    %cst_39 = arith.constant dense<true> : vector<8x1xi1>
    %126 = arith.xori %123, %cst_39 : vector<8x1xi1>
    %127 = arith.cmpf ogt, %125, %99 : vector<8x1xf32>
    %128 = arith.andi %126, %127 : vector<8x1xi1>
    %129 = arith.select %128, %44, %122 : vector<8x1xi1>, vector<8x1xf32>
    %130 = arith.ori %123, %128 : vector<8x1xi1>
    %131 = math.exp %56 : vector<8x1xf32>
    %132 = arith.addf %125, %131 : vector<8x1xf32>
    %cst_40 = arith.constant dense<true> : vector<8x1xi1>
    %133 = arith.xori %130, %cst_40 : vector<8x1xi1>
    %134 = arith.cmpf ogt, %132, %99 : vector<8x1xf32>
    %135 = arith.andi %133, %134 : vector<8x1xi1>
    %136 = arith.select %135, %56, %129 : vector<8x1xi1>, vector<8x1xf32>
    %137 = arith.ori %130, %135 : vector<8x1xi1>
    %138 = math.exp %68 : vector<8x1xf32>
    %139 = arith.addf %132, %138 : vector<8x1xf32>
    %cst_41 = arith.constant dense<true> : vector<8x1xi1>
    %140 = arith.xori %137, %cst_41 : vector<8x1xi1>
    %141 = arith.cmpf ogt, %139, %99 : vector<8x1xf32>
    %142 = arith.andi %140, %141 : vector<8x1xi1>
    %143 = arith.select %142, %68, %136 : vector<8x1xi1>, vector<8x1xf32>
    %144 = arith.ori %137, %142 : vector<8x1xi1>
    %145 = math.exp %80 : vector<8x1xf32>
    %146 = arith.addf %139, %145 : vector<8x1xf32>
    %cst_42 = arith.constant dense<true> : vector<8x1xi1>
    %147 = arith.xori %144, %cst_42 : vector<8x1xi1>
    %148 = arith.cmpf ogt, %146, %99 : vector<8x1xf32>
    %149 = arith.andi %147, %148 : vector<8x1xi1>
    %150 = arith.select %149, %80, %143 : vector<8x1xi1>, vector<8x1xf32>
    %151 = arith.ori %144, %149 : vector<8x1xi1>
    %152 = math.exp %92 : vector<8x1xf32>
    %153 = arith.addf %146, %152 : vector<8x1xf32>
    %cst_43 = arith.constant dense<true> : vector<8x1xi1>
    %154 = arith.xori %151, %cst_43 : vector<8x1xi1>
    %155 = arith.cmpf ogt, %153, %99 : vector<8x1xf32>
    %156 = arith.andi %154, %155 : vector<8x1xi1>
    %157 = arith.select %156, %92, %150 : vector<8x1xi1>, vector<8x1xf32>
    %158 = arith.ori %151, %156 : vector<8x1xi1>
    %159 = vector.broadcast %92 : vector<8x1xf32> to vector<8x128xf32>
    %160 = arith.cmpf oge, %5, %159 : vector<8x128xf32>
    %cst_44 = arith.constant 0.000000e+00 : f32
    %161 = vector.broadcast %cst_44 : f32 to vector<8x128xf32>
    %162 = arith.select %160, %95, %161 : vector<8x128xi1>, vector<8x128xf32>
    %cst_45 = arith.constant dense<0.000000e+00> : vector<8xf32>
    %163 = vector.multi_reduction <add>, %162, %cst_45 [1] : vector<8x128xf32> to vector<8xf32>
    %164 = vector.shape_cast %163 : vector<8xf32> to vector<8x1xf32>
    %165 = arith.cmpf ogt, %164, %99 : vector<8x1xf32>
    %166 = arith.select %165, %92, %8 : vector<8x1xi1>, vector<8x1xf32>
    %167 = arith.select %158, %157, %166 : vector<8x1xi1>, vector<8x1xf32>
    %168 = arith.maximumf %94, %167 : vector<8x1xf32>
    %169 = vector.broadcast %168 : vector<8x1xf32> to vector<8x128xf32>
    %170 = arith.cmpf oge, %5, %169 : vector<8x128xf32>
    %cst_46 = arith.constant 1.250000e+00 : f32
    %171 = vector.broadcast %cst_46 : f32 to vector<8x128xf32>
    %172 = arith.mulf %171, %5 : vector<8x128xf32>
    %173 = arith.addf %172, %1 : vector<8x128xf32>
    %cst_47 = arith.constant 0xFF800000 : f32
    %174 = vector.broadcast %cst_47 : f32 to vector<8x128xf32>
    %175 = arith.select %170, %173, %174 : vector<8x128xi1>, vector<8x128xf32>
    %cst_48 = arith.constant dense<0xFF800000> : vector<8xf32>
    %176 = vector.multi_reduction <maximumf>, %175, %cst_48 [1] : vector<8x128xf32> to vector<8xf32>
    %177 = vector.shape_cast %176 : vector<8xf32> to vector<8x1xf32>
    %178 = vector.broadcast %177 : vector<8x1xf32> to vector<8x128xf32>
    %179 = arith.cmpf oeq, %175, %178 : vector<8x128xf32>
    %c128_i32_49 = arith.constant 128 : i32
    %180 = vector.broadcast %c128_i32_49 : i32 to vector<8x128xi32>
    %181 = arith.select %179, %6, %180 : vector<8x128xi1>, vector<8x128xi32>
    %cst_50 = arith.constant dense<2147483647> : vector<8xi32>
    %182 = vector.multi_reduction <minsi>, %181, %cst_50 [1] : vector<8x128xi32> to vector<8xi32>
    %183 = vector.shape_cast %182 : vector<8xi32> to vector<8x1xi32>
    %184 = vector.shape_cast %183 : vector<8x1xi32> to vector<8x1xi32>
    %185 = vector.broadcast %184 : vector<8x1xi32> to vector<8x128xi32>
    %c0_51 = arith.constant 0 : index
    %c0_52 = arith.constant 0 : index
    %186 = vector.load %arg3[%c0_51, %c0_52] : memref<8x128xi32, #tpu.memory_space<vmem>>, vector<8x128xi32>
    tpu.vector_store %arg3[%c0_51, %c0_52], %185 {strides = array<i32>} : memref<8x128xi32, #tpu.memory_space<vmem>>, vector<8x128xi32>,
    return
  }
  func.func @transform_0(%arg0: i32) -> (i32, i32) {
    %c0_i32 = arith.constant 0 : i32
    %c0_i32_0 = arith.constant 0 : i32
    return %arg0, %c0_i32 : i32, i32
  }
  func.func @transform_1(%arg0: i32) -> (i32, i32) {
    %c0_i32 = arith.constant 0 : i32
    %c0_i32_0 = arith.constant 0 : i32
    return %arg0, %c0_i32 : i32, i32
  }
  func.func @transform_2(%arg0: i32) -> (i32, i32) {
    %c0_i32 = arith.constant 0 : i32
    %c0_i32_0 = arith.constant 0 : i32
    return %arg0, %c0_i32 : i32, i32
  }
}

</mosaic_0001>

<bundles_post_ra>
// kernel: tpu_custom_call.1
= control target key start
LH: loop header
LB: loop body
LE: loop exit
PB: predicated region body
PF: predicated region fallthrough
CT: control target
= control target key end

     0   :  { %7 = vsyncpa [#allocation3], 0  ;;  %s1130_s0 = inlined_call_operand.hbm [shape: f32[16,128], index: 0, kind: input, shape index: {}]   ;;  %s1131_s1 = inlined_call_operand.hbm [shape: f32[16,128], index: 1, kind: input, shape index: {}]   ;;  %s1132_s2 = inlined_call_operand.hbm [shape: s32[16,128], index: 2, kind: output, shape index: {}]  }
   0x1   :  { %9 = vsyncpa [#allocation3 + $0x1], 0 }
   0x2   :  { %10 = vsyncpa [#allocation6], 0 }
   0x3   :  { %12 = vsyncpa [#allocation6 + $0x1], 0 }
   0x4   :  { %13 = vsyncpa [#allocation4], 0 }
   0x5   :  { %15 = vsyncpa [#allocation4 + $0x1], 0  ;;  %s788_s9 = smov 0   ;;  %s790_s10 = smov 0  }
   0x6   :  { %s792_s11 = smov 0   ;;  %s794_s12 = smov 0  }
   0x7 LB: > { %s809_s13 = sadd.s32 4294967295, %s770_s12   ;;  %s555_s14 = sadd.s32 4294967294, %s770_s12   ;;  %s770_s12 = sphi %s794_s12, %s1161_s12   ;;  %s766_s11 = sphi %s792_s11, %s1160_s11   ;;  %s762_s10 = sphi %s790_s10, %s1159_s10   ;;  %s758_s9 = sphi %s788_s9, %s1158_s9  }
   0x8   : > { %s813_s15 = sadd.s32 1, %s770_s12   ;;  %s28_s16 = sadd.s32 1, %s766_s11 }
   0x9   : > { %s25_s17 = ssub.s32 %s770_s12, %s813_s15  ;;  %p35_p0 = scmp.ne.s32.totalorder %s766_s11, %s762_s10 }
   0xa   : > { %p26_p1 = scmp.eq.s32.totalorder %s25_s17, 0  ;;  %p36_p2 = scmp.eq.s32.totalorder %s770_s12, 0 }
   0xb   : > { %p41_p3 = scmp.ne.s32.totalorder %s762_s10, %s758_s9  ;;  %p42_p4 = scmp.eq.s32.totalorder %s809_s13, 0 }
   0xc   : > { %s825_s18 = scalar_select %p26_p1, %s766_s11, %s28_s16  }
   0xd   : > { %p827_p5 = por %p36_p2, %p35_p0  ;;  %p831_p6 = por %p42_p4, %p41_p3 }
   0xe   : > { %p91_p7 = scmp.eq.s32.totalorder %s809_s13, 1  ;;  %p97_p8 = scmp.eq.s32.totalorder %s555_s14, 1 }
   0xf   : > { %p587_p10 = scmp.lt.s32.totalorder %s770_s12, 2  ;;  %s847_s23 = sand.u32 1, %s766_s11  }
  0x10   : > { %p838_p11 = por %p91_p7, %p35_p0  ;;  %p842_p12 = por %p97_p8, %p41_p3 }
  0x11   : > { %s559_s24 = sshll.u32 %s770_s12, 3  ;;  %s558_s25 = sshll.u32 %s847_s23, 3 }
  0x12   : > { %s125_s28 = scalar_lea.hbm %s1130_s0, %s559_s24  ;;  %s121_s30 = scalar_lea.vmem [#allocation2], %s558_s25 }
  0x13   : > { %s127_s29 = sshll.u32 %s125_s28, 4  ;;  %s129_s3 = sshll.u32 %s121_s30, 4  ;;  %s128_s29 = int_to_ptr.hbm [resolvable:$true] %s127_s29  ;;  %s130_s3 = int_to_ptr.vmem [resolvable:$true] %s129_s3 }
  0x14   : > { %p856_p13 = pnand %p587_p10, %p827_p5  ;;  %p562_p0 = scmp.ge.s32.totalorder %s770_s12, 1 }
  0x15   : > { %p153_p1 = scmp.lt.s32.totalorder %s770_s12, 3  ;;  %s118_s5 = scalar_lea.sflag [#allocation3], %s847_s23 }
  0x16   : > { %s640_s6 = sshra.s32 %s128_s29, 4  ;;  %p644_p3 = pneg %p856_p13  ;;  %s641_s6 = int_to_ptr.hbm [resolvable:$true] %s640_s6 }
  0x17   : > { %s642_s7 = scalar_lea.hbm %s641_s6, 8  ;;  %s647_s16 = scalar_lea.hbm %s1130_s0, 16 }
  0x18   : > { %p643_p2 = scmp.ne.s32.totalorder %s641_s6, %s642_s7  ;;  %p648_p5 = scmp.lt.s32.totalorder %s641_s6, %s1130_s0 }
  0x19   : > { %p649_p8 = scmp.lt.s32.totalorder %s647_s16, %s642_s7 }
  0x1a   : > { %p645_p4 = pnand %p644_p3, %p643_p2 }
  0x1b   : > { %p650_p10 = por %p649_p8, %p648_p5 }
  0x1c   : > { %p646_p7 = pneg %p645_p4 }
  0x1e   : > { %p651_p9 = pnand %p650_p10, %p646_p7 }
  0x20   : > { %654 = shalt.err (!%p651_p9)
}
  0x21   : > { %579 = dma.hbm_to_vmem [thread:$0]  (!%p856_p13), %s128_s29, 128, %s130_s3, %s118_s5  }
  0x22   : > { %p880_p2 = pnand %p562_p0, %p153_p1  ;;  %s144_s30 = scalar_lea.hbm %s1131_s1, %s559_s24 }
  0x23   : > { %s146_s6 = sshll.u32 %s144_s30, 4  ;;  %s140_s7 = scalar_lea.vmem [#allocation5], %s558_s25  ;;  %s147_s6 = int_to_ptr.hbm [resolvable:$true] %s146_s6 }
  0x24   : > { %s148_s8 = sshll.u32 %s140_s7, 4  ;;  %s137_s14 = scalar_lea.sflag [#allocation6], %s847_s23  ;;  %s149_s8 = int_to_ptr.vmem [resolvable:$true] %s148_s8 }
  0x25   : > { %s670_s16 = sshra.s32 %s147_s6, 4  ;;  %s677_s5 = scalar_lea.hbm %s1131_s1, 16  ;;  %s671_s16 = int_to_ptr.hbm [resolvable:$true] %s670_s16 }
  0x26   : > { %s672_s17 = scalar_lea.hbm %s671_s16, 8  ;;  %p678_p4 = scmp.lt.s32.totalorder %s671_s16, %s1131_s1 }
  0x27   : > { %p673_p9 = scmp.ne.s32.totalorder %s671_s16, %s672_s17  ;;  %p679_p7 = scmp.lt.s32.totalorder %s677_s5, %s672_s17 }
  0x29   : > { %p675_p0 = pnand %p673_p9, %p644_p3  ;;  %p680_p5 = por %p679_p7, %p678_p4 }
  0x2b   : > { %p676_p1 = pneg %p675_p0 }
  0x2d   : > { %p681_p8 = pnand %p680_p5, %p676_p1 }
  0x2f   : > { %684 = shalt.err (!%p681_p8)
}
  0x30   : > { %582 = dma.hbm_to_vmem [thread:$0]  (!%p856_p13), %s147_s6, 128, %s149_s8, %s137_s14  }
  0x31   : > { %157 = sbr.rel (%p880_p2) target bundleno = 3314 (0xcf2), region = 28  ;;  %s902_s23 = sand.u32 (!%p880_p2), 1, %s762_s10  }
  0x32   : > { %s905_s25 = sshll.u32 (!%p880_p2), %s902_s23, 3  ;;  %s160_s27 = scalar_lea.sflag (!%p880_p2), [#allocation3], %s902_s23 }
  0x33   : > { %s163_s28 = scalar_lea.vmem (!%p880_p2), [#allocation2], %s905_s25 }
  0x36   : > { %745 = dma.done.wait (%p831_p6), %s160_s27, 128  }
  0x37   : > { %747 = vsyncadd (%p831_p6), %s160_s27, 4294967168  ;;  %s170_s4 = scalar_lea.sflag [#allocation6], %s902_s23  ;;  %s173_s26 = scalar_lea.vmem [#allocation5], %s905_s25 }
  0x38   : > { %749 = dma.done.wait (%p831_p6), %s170_s4, 128  }
  0x39   : > { %751 = vsyncadd (%p831_p6), %s170_s4, 4294967168  ;;  %v200_v0 = vld [vmem:[%s163_s28] sm:$0xff]  ;;  %v205_v3 = vlaneseq  ;;  %s567_s20 = sshll.u32 %s809_s13, 3  ;;  %s199_s8 = scalar_lea.vmem [#allocation7], %s905_s25 }
  0x3a   : > { %202 = vmax.xlane.f32.xlu0 %v200_v0  ;;  %s457_s7 = scalar_lea.hbm %s1132_s2, %s567_s20  ;;  %s459_s14 = sshll.u32 %s199_s8, 4  ;;  %s460_s14 = int_to_ptr.vmem [resolvable:$true] %s459_s14 }
  0x3b   : > { %v922_v4 = vand.u32 127, %v205_v3  ;;  %s461_s16 = sshll.u32 %s457_s7, 4  ;;  %s447_s17 = scalar_lea.sflag [#allocation4], %s902_s23  ;;  %s462_s16 = int_to_ptr.hbm [resolvable:$true] %s461_s16 }
  0x3c   : > { %s714_s29 = sshra.s32 %s462_s16, 4  ;;  %s720_s19 = scalar_lea.hbm %s1132_s2, 16  ;;  %s715_s29 = int_to_ptr.hbm [resolvable:$true] %s714_s29 }
  0x3d   : > { %s716_s13 = scalar_lea.hbm %s715_s29, 8  ;;  %p721_p10 = scmp.lt.s32.totalorder %s715_s29, %s1132_s2 }
  0x3e   : > { %p717_p6 = scmp.ne.s32.totalorder %s715_s29, %s716_s13  ;;  %p722_p2 = scmp.lt.s32.totalorder %s720_s19, %s716_s13 }
  0x40   : > { %p718_p13 = pnand %p717_p6, %p838_p11  ;;  %p723_p9 = por %p722_p2, %p721_p10 }
  0x42   : > { %p719_p3 = pneg %p718_p13 }
  0x44   : > { %p724_p0 = pnand %p723_p9, %p719_p3 }
  0xad   : > { %v203_v1 = vpop.xlane.xlu0 %202 }
  0xae   : > { %v919_v2 = vsub.f32 %v200_v0, %v203_v1 }
  0xb0   : > { %207 = vmax.xlane.f32.xlu0 %v919_v2 }
 0x123   : > { %v924_v5 = vpop.xlane.xlu0 %207 }
 0x124   : > { %vm209_vm0 = vcmp.eq.f32.partialorder %v919_v2, %v924_v5 }
 0x125   : > { %v210_v6 = vsel %vm209_vm0, %v922_v4, 128 }
 0x126   : > { %v212_v7 = vshra.s32 %v210_v6, 16  ;;  %v211_v9 = vand.u32 65535, %v210_v6 }
 0x128   : > { %v214_v8 = vcvt.s32.f32 %v212_v7  ;;  %v213_v11 = vcvt.s32.f32 %v211_v9 }
 0x12a   : > { %215 = vmin.xlane.f32.xlu1 %v214_v8 }
 0x19d   : > { %v216_v10 = vpop.xlane.xlu1 %215 }
 0x19e   : > { %vm217_vm1 = vcmp.eq.f32.partialorder %v214_v8, %v216_v10  ;;  %v222_v13 = vcvt.f32.s32 %v216_v10 }
 0x19f   : > { %v218_v12 = vsel %vm217_vm1, %v213_v11, inf }
 0x1a0   : > { %219 = vmin.xlane.f32.xlu1 %v218_v12  ;;  %v223_v15 = vshll.u32 %v222_v13, 16 }
 0x213   : > { %v220_v14 = vpop.xlane.xlu1 %219 }
 0x214   : > { %v221_v16 = vcvt.f32.s32 %v220_v14 }
 0x216   : > { %v224_v17 = vadd.s32 %v223_v15, %v221_v16 }
 0x218   : > { %vm225_vm2 = vcmp.eq.s32.totalorder %v922_v4, %v224_v17 }
 0x219   : > { %v226_v18 = vsel %vm225_vm2, -inf, %v919_v2 }
 0x21a   : > { %227 = vmax.xlane.f32.xlu2 %v226_v18 }
 0x28d   : > { %v931_v19 = vpop.xlane.xlu2 %227 }
 0x28e   : > { %vm229_vm3 = vcmp.eq.f32.partialorder %v226_v18, %v931_v19 }
 0x28f   : > { %v230_v20 = vsel %vm229_vm3, %v922_v4, 128 }
 0x290   : > { %v232_v21 = vshra.s32 %v230_v20, 16  ;;  %v231_v23 = vand.u32 65535, %v230_v20 }
 0x292   : > { %v234_v22 = vcvt.s32.f32 %v232_v21  ;;  %v233_v25 = vcvt.s32.f32 %v231_v23 }
 0x294   : > { %235 = vmin.xlane.f32.xlu2 %v234_v22 }
 0x307   : > { %v236_v24 = vpop.xlane.xlu2 %235 }
 0x308   : > { %vm237_vm4 = vcmp.eq.f32.partialorder %v234_v22, %v236_v24  ;;  %v242_v27 = vcvt.f32.s32 %v236_v24 }
 0x309   : > { %v238_v26 = vsel %vm237_vm4, %v233_v25, inf }
 0x30a   : > { %239 = vmin.xlane.f32.xlu0 %v238_v26  ;;  %v243_v29 = vshll.u32 %v242_v27, 16 }
 0x37d   : > { %v240_v28 = vpop.xlane.xlu0 %239 }
 0x37e   : > { %v241_v30 = vcvt.f32.s32 %v240_v28 }
 0x380   : > { %v244_v31 = vadd.s32 %v243_v29, %v241_v30 }
 0x382   : > { %vm245_vm5 = vcmp.eq.s32.totalorder %v922_v4, %v244_v31 }
 0x383   : > { %v246_v32 = vsel %vm245_vm5, -inf, %v226_v18 }
 0x384   : > { %247 = vmax.xlane.f32.xlu1 %v246_v32 }
 0x3f7   : > { %v936_v33 = vpop.xlane.xlu1 %247 }
 0x3f8   : > { %vm249_vm6 = vcmp.eq.f32.partialorder %v246_v32, %v936_v33 }
 0x3f9   : > { %v250_v34 = vsel %vm249_vm6, %v922_v4, 128 }
 0x3fa   : > { %v252_v35 = vshra.s32 %v250_v34, 16  ;;  %v251_v37 = vand.u32 65535, %v250_v34 }
 0x3fc   : > { %v254_v36 = vcvt.s32.f32 %v252_v35  ;;  %v253_v39 = vcvt.s32.f32 %v251_v37 }
 0x3fe   : > { %255 = vmin.xlane.f32.xlu2 %v254_v36 }
 0x471   : > { %v256_v38 = vpop.xlane.xlu2 %255 }
 0x472   : > { %vm257_vm7 = vcmp.eq.f32.partialorder %v254_v36, %v256_v38  ;;  %v262_v41 = vcvt.f32.s32 %v256_v38 }
 0x473   : > { %v258_v40 = vsel %vm257_vm7, %v253_v39, inf  ;;  %vm772_vm7 = vmmov 1  }
 0x474   : > { %259 = vmin.xlane.f32.xlu0 %v258_v40  ;;  %v263_v43 = vshll.u32 %v262_v41, 16 }
 0x4e7   : > { %v260_v42 = vpop.xlane.xlu0 %259 }
 0x4e8   : > { %v261_v44 = vcvt.f32.s32 %v260_v42 }
 0x4ea   : > { %v264_v45 = vadd.s32 %v263_v43, %v261_v44 }
 0x4ec   : > { %vm265_vm8 = vcmp.eq.s32.totalorder %v922_v4, %v264_v45 }
 0x4ed   : > { %v266_v46 = vsel %vm265_vm8, -inf, %v246_v32  ;;  %v349_v32 = vmul.f32 1.442695, %v919_v2 }
 0x4ee   : > { %267 = vmax.xlane.f32.xlu1 %v266_v46 }
 0x4ef   : > { %622 = vpow2.f32 %v349_v32 }
 0x4f5   : > { %v623_v35 = vpop.eup %622 }
 0x561   : > { %v941_v47 = vpop.xlane.xlu1 %267 }
 0x562   : > { %vm269_vm9 = vcmp.eq.f32.partialorder %v266_v46, %v941_v47 }
 0x563   : > { %v270_v48 = vsel %vm269_vm9, %v922_v4, 128 }
 0x564   : > { %v272_v49 = vshra.s32 %v270_v48, 16  ;;  %v271_v51 = vand.u32 65535, %v270_v48 }
 0x566   : > { %v274_v50 = vcvt.s32.f32 %v272_v49  ;;  %v273_v53 = vcvt.s32.f32 %v271_v51  ;;  %v359_v49 = vmul.f32 1.442695, %v931_v19 }
 0x568   : > { %275 = vmin.xlane.f32.xlu2 %v274_v50  ;;  %624 = vpow2.f32 %v359_v49 }
 0x5db   : > { %v276_v52 = vpop.xlane.xlu2 %275 }
 0x5dc   : > { %vm277_vm10 = vcmp.eq.f32.partialorder %v274_v50, %v276_v52  ;;  %v282_v55 = vcvt.f32.s32 %v276_v52  ;;  %v354_v50 = vmul.f32 1.442695, %v924_v5 }
 0x5dd   : > { %v278_v54 = vsel %vm277_vm10, %v273_v53, inf  ;;  %v625_v53 = vpop.eup %624 }
 0x5de   : > { %279 = vmin.xlane.f32.xlu0 %v278_v54  ;;  %v283_v57 = vshll.u32 %v282_v55, 16  ;;  %626 = vpow2.f32 %v354_v50  ;;  %v367_v55 = vmul.f32 1.442695, %v936_v33 }
 0x5e0   : > { %628 = vpow2.f32 %v367_v55 }
 0x5e4   : > { %v627_v54 = vpop.eup %626 }
 0x651   : > { %v280_v56 = vpop.xlane.xlu0 %279 }
 0x652   : > { %v281_v58 = vcvt.f32.s32 %v280_v56  ;;  %v361_v56 = vadd.f32 %v627_v54, %v625_v53 }
 0x654   : > { %v284_v59 = vadd.s32 %v283_v57, %v281_v58  ;;  %v375_v58 = vmul.f32 1.442695, %v941_v47 }
 0x656   : > { %vm285_vm11 = vcmp.eq.s32.totalorder %v922_v4, %v284_v59  ;;  %v629_v59 = vpop.eup %628  ;;  %630 = vpow2.f32 %v375_v58 }
 0x657   : > { %v286_v60 = vsel %vm285_vm11, -inf, %v266_v46 }
 0x658   : > { %287 = vmax.xlane.f32.xlu1 %v286_v60 }
 0x6cb   : > { %v946_v61 = vpop.xlane.xlu1 %287 }
 0x6cc   : > { %vm289_vm12 = vcmp.eq.f32.partialorder %v286_v60, %v946_v61 }
 0x6cd   : > { %v290_v62 = vsel %vm289_vm12, %v922_v4, 128 }
 0x6ce   : > { %v292_v63 = vshra.s32 %v290_v62, 16  ;;  %v291_v1 = vand.u32 65535, %v290_v62  ;;  %v369_v62 = vadd.f32 %v629_v59, %v361_v56 }
 0x6d0   : > { %v294_v0 = vcvt.s32.f32 %v292_v63  ;;  %v293_v6 = vcvt.s32.f32 %v291_v1  ;;  %v631_v1 = vpop.eup %630 }
 0x6d2   : > { %295 = vmin.xlane.f32.xlu2 %v294_v0 }
 0x745   : > { %v296_v3 = vpop.xlane.xlu2 %295 }
 0x746   : > { %vm297_vm13 = vcmp.eq.f32.partialorder %v294_v0, %v296_v3  ;;  %v302_v8 = vcvt.f32.s32 %v296_v3  ;;  %v383_v0 = vmul.f32 1.442695, %v946_v61  ;;  %v377_v3 = vadd.f32 %v631_v1, %v369_v62 }
 0x747   : > { %v298_v7 = vsel %vm297_vm13, %v293_v6, inf }
 0x748   : > { %299 = vmin.xlane.f32.xlu0 %v298_v7  ;;  %v303_v10 = vshll.u32 %v302_v8, 16  ;;  %632 = vpow2.f32 %v383_v0 }
 0x74e   : > { %v633_v8 = vpop.eup %632 }
 0x7bb   : > { %v300_v9 = vpop.xlane.xlu0 %299 }
 0x7bc   : > { %v301_v11 = vcvt.f32.s32 %v300_v9 }
 0x7be   : > { %v304_v12 = vadd.s32 %v303_v10, %v301_v11  ;;  %v385_v10 = vadd.f32 %v633_v8, %v377_v3 }
 0x7c0   : > { %vm305_vm14 = vcmp.eq.s32.totalorder %v922_v4, %v304_v12 }
 0x7c1   : > { %v306_v13 = vsel %vm305_vm14, -inf, %v286_v60 }
 0x7c2   : > { %307 = vmax.xlane.f32.xlu1 %v306_v13 }
 0x835   : > { %v951_v14 = vpop.xlane.xlu1 %307 }
 0x836   : > { %vm309_vm15 = vcmp.eq.f32.partialorder %v306_v13, %v951_v14  ;;  %v391_v7 = vmul.f32 1.442695, %v951_v14 }
 0x837   : > { %v310_v15 = vsel %vm309_vm15, %v922_v4, 128 }
 0x838   : > { %v312_v16 = vshra.s32 %v310_v15, 16  ;;  %v311_v18 = vand.u32 65535, %v310_v15  ;;  %634 = vpow2.f32 %v391_v7 }
 0x83a   : > { %v314_v17 = vcvt.s32.f32 %v312_v16  ;;  %v313_v21 = vcvt.s32.f32 %v311_v18 }
 0x83c   : > { %315 = vmin.xlane.f32.xlu2 %v314_v17 }
 0x8af   : > { %v316_v20 = vpop.xlane.xlu2 %315 }
 0x8b0   : > { %vm317_vm0 = vcmp.eq.f32.partialorder %v314_v17, %v316_v20  ;;  %v322_v23 = vcvt.f32.s32 %v316_v20 }
 0x8b1   : > { %v318_v22 = vsel %vm317_vm0, %v313_v21, inf }
 0x8b2   : > { %319 = vmin.xlane.f32.xlu0 %v318_v22  ;;  %v323_v25 = vshll.u32 %v322_v23, 16 }
 0x925   : > { %v320_v24 = vpop.xlane.xlu0 %319 }
 0x926   : > { %v321_v26 = vcvt.f32.s32 %v320_v24 }
 0x928   : > { %v324_v27 = vadd.s32 %v323_v25, %v321_v26 }
 0x92a   : > { %vm325_vm1 = vcmp.eq.s32.totalorder %v922_v4, %v324_v27 }
 0x92b   : > { %v326_v28 = vsel %vm325_vm1, -inf, %v306_v13  ;;  %v635_v13 = vpop.eup %634 }
 0x92c   : > { %327 = vmax.xlane.f32.xlu1 %v326_v28  ;;  %v393_v16 = vadd.f32 %v635_v13, %v385_v10 }
 0x99f   : > { %v956_v29 = vpop.xlane.xlu1 %327 }
 0x9a0   : > { %vm329_vm2 = vcmp.eq.f32.partialorder %v326_v28, %v956_v29  ;;  %v399_v12 = vmul.f32 1.442695, %v956_v29 }
 0x9a1   : > { %v330_v30 = vsel %vm329_vm2, %v922_v4, 128 }
 0x9a2   : > { %v332_v31 = vshra.s32 %v330_v30, 16  ;;  %v331_v36 = vand.u32 65535, %v330_v30  ;;  %636 = vpow2.f32 %v399_v12 }
 0x9a4   : > { %v334_v34 = vcvt.s32.f32 %v332_v31  ;;  %v333_v38 = vcvt.s32.f32 %v331_v36  ;;  %v424_v31 = vmul.f32 1.25, %v919_v2 }
 0x9a6   : > { %335 = vmin.xlane.f32.xlu2 %v334_v34 }
 0x9a8   : > { %v637_v18 = vpop.eup %636 }
 0x9a9   : > { %v401_v22 = vadd.f32 %v637_v18, %v393_v16 }
 0x9ae   : > { %351 = vadd.xlane.f32.xlu2 %v623_v35 }
 0xa19   : > { %v336_v37 = vpop.xlane.xlu2 %335 }
 0xa1a   : > { %vm337_vm3 = vcmp.eq.f32.partialorder %v334_v34, %v336_v37  ;;  %v342_v40 = vcvt.f32.s32 %v336_v37  ;;  %v201_v34 = vld [vmem:[%s173_s26] sm:$0xff] }
 0xa1b   : > { %v338_v39 = vsel %vm337_vm3, %v333_v38, inf  ;;  %v425_v36 = vadd.f32 %v424_v31, %v201_v34 }
 0xa1c   : > { %339 = vmin.xlane.f32.xlu0 %v338_v39  ;;  %v343_v42 = vshll.u32 %v342_v40, 16 }
 0xa21   : > { %v352_v51 = vpop.xlane.xlu2 %351 }
 0xa22   : > { %v968_v52 = vmul.f32 0.9, %v352_v51 }
 0xa24   : > { %vm357_vm6 = vcmp.gt.f32.partialorder %v627_v54, %v968_v52  ;;  %vm363_vm9 = vcmp.gt.f32.partialorder %v361_v56, %v968_v52  ;;  %vm371_vm13 = vcmp.gt.f32.partialorder %v369_v62, %v968_v52  ;;  %vm379_vm1 = vcmp.gt.f32.partialorder %v377_v3, %v968_v52 }
 0xa25   : > { %vm362_vm8 = vmxor %vm357_vm6, %vm772_vm7  ;;  %v358_v25 = vsel %vm357_vm6, %v924_v5, -inf }
 0xa26   : > { %vm976_vm10 = vmand %vm362_vm8, %vm363_vm9 }
 0xa27   : > { %vm985_vm11 = vmor %vm357_vm6, %vm976_vm10  ;;  %v365_v26 = vsel %vm976_vm10, %v931_v19, %v358_v25 }
 0xa28   : > { %vm370_vm12 = vmxor %vm985_vm11, %vm772_vm7 }
 0xa29   : > { %vm993_vm14 = vmand %vm370_vm12, %vm371_vm13  ;;  %vm395_vm12 = vcmp.gt.f32.partialorder %v393_v16, %v968_v52 }
 0xa2a   : > { %vm374_vm15 = vmor %vm985_vm11, %vm993_vm14  ;;  %v373_v27 = vsel %vm993_vm14, %v936_v33, %v365_v26 }
 0xa2b   : > { %vm378_vm0 = vmxor %vm374_vm15, %vm772_vm7 }
 0xa2c   : > { %vm1004_vm2 = vmand %vm378_vm0, %vm379_vm1  ;;  %vm403_vm1 = vcmp.gt.f32.partialorder %v401_v22, %v968_v52 }
 0xa2d   : > { %vm1011_vm3 = vmor %vm374_vm15, %vm1004_vm2 }
 0xa8f   : > { %v340_v41 = vpop.xlane.xlu0 %339 }
 0xa90   : > { %v341_v43 = vcvt.f32.s32 %v340_v41 }
 0xa92   : > { %v344_v44 = vadd.s32 %v343_v42, %v341_v43 }
 0xa94   : > { %vm345_vm4 = vcmp.eq.s32.totalorder %v922_v4, %v344_v44 }
 0xa95   : > { %v346_v45 = vsel %vm345_vm4, -inf, %v326_v28  ;;  %vm386_vm4 = vmxor %vm1011_vm3, %vm772_vm7  ;;  %v381_v28 = vsel %vm1004_vm2, %v941_v47, %v373_v27 }
 0xa96   : > { %347 = vmax.xlane.f32.xlu1 %v346_v45 }
 0xb09   : > { %v962_v46 = vpop.xlane.xlu1 %347 }
 0xb0a   : > { %vm415_vm5 = vcmp.ge.f32.partialorder %v919_v2, %v962_v46  ;;  %v407_v15 = vmul.f32 1.442695, %v962_v46 }
 0xb0b   : > { %v416_v48 = vsel %vm415_vm5, %v623_v35, 0.0  ;;  %vm387_vm5 = vcmp.gt.f32.partialorder %v385_v10, %v968_v52 }
 0xb0c   : > { %417 = vadd.xlane.f32.xlu0 %v416_v48  ;;  %vm1019_vm8 = vmand %vm386_vm4, %vm387_vm5  ;;  %638 = vpow2.f32 %v407_v15 }
 0xb0d   : > { %vm390_vm9 = vmor %vm1011_vm3, %vm1019_vm8  ;;  %v389_v19 = vsel %vm1019_vm8, %v946_v61, %v381_v28 }
 0xb0e   : > { %vm394_vm11 = vmxor %vm390_vm9, %vm772_vm7 }
 0xb0f   : > { %vm1031_vm13 = vmand %vm394_vm11, %vm395_vm12 }
 0xb10   : > { %vm1037_vm15 = vmor %vm390_vm9, %vm1031_vm13  ;;  %v397_v33 = vsel %vm1031_vm13, %v951_v14, %v389_v19 }
 0xb11   : > { %vm402_vm0 = vmxor %vm1037_vm15, %vm772_vm7 }
 0xb12   : > { %v639_v21 = vpop.eup %638  ;;  %vm1045_vm3 = vmand %vm402_vm0, %vm403_vm1 }
 0xb13   : > { %v409_v24 = vadd.f32 %v639_v21, %v401_v22  ;;  %vm406_vm4 = vmor %vm1037_vm15, %vm1045_vm3  ;;  %v405_v47 = vsel %vm1045_vm3, %v956_v29, %v397_v33 }
 0xb14   : > { %vm410_vm6 = vmxor %vm406_vm4, %vm772_vm7 }
 0xb15   : > { %vm411_vm5 = vcmp.gt.f32.partialorder %v409_v24, %v968_v52 }
 0xb16   : > { %vm412_vm10 = vmand %vm410_vm6, %vm411_vm5 }
 0xb17   : > { %v413_v61 = vsel %vm412_vm10, %v962_v46, %v405_v47  ;;  %vm414_vm7 = vmor %vm406_vm4, %vm412_vm10 }
 0xb7f   : > { %v418_v30 = vpop.xlane.xlu0 %417 }
 0xb80   : > { %vm419_vm14 = vcmp.gt.f32.partialorder %v418_v30, %v968_v52 }
 0xb81   : > { %v420_v32 = vsel %vm419_vm14, %v962_v46, %v924_v5 }
 0xb82   : > { %v421_v14 = vsel %vm414_vm7, %v413_v61, %v420_v32 }
 0xb83   : > { %v422_v35 = vmax.f32 %v962_v46, %v421_v14 }
 0xb85   : > { %vm423_vm2 = vcmp.ge.f32.partialorder %v919_v2, %v422_v35 }
 0xb86   : > { %v426_v29 = vsel %vm423_vm2, %v425_v36, -inf }
 0xb87   : > { %427 = vmax.xlane.f32.xlu1 %v426_v29 }
 0xbfa   : > { %v428_v5 = vpop.xlane.xlu1 %427 }
 0xbfb   : > { %vm429_vm8 = vcmp.eq.f32.partialorder %v426_v29, %v428_v5 }
 0xbfc   : > { %v430_v37 = vsel %vm429_vm8, %v922_v4, 128 }
 0xbfd   : > { %v432_v38 = vshra.s32 %v430_v37, 16  ;;  %v431_v40 = vand.u32 65535, %v430_v37 }
 0xbff   : > { %v434_v39 = vcvt.s32.f32 %v432_v38  ;;  %v433_v42 = vcvt.s32.f32 %v431_v40 }
 0xc01   : > { %435 = vmin.xlane.f32.xlu2 %v434_v39 }
 0xc74   : > { %v436_v41 = vpop.xlane.xlu2 %435 }
 0xc75   : > { %vm437_vm9 = vcmp.eq.f32.partialorder %v434_v39, %v436_v41  ;;  %v442_v44 = vcvt.f32.s32 %v436_v41 }
 0xc76   : > { %v438_v43 = vsel %vm437_vm9, %v433_v42, inf }
 0xc77   : > { %439 = vmin.xlane.f32.xlu0 %v438_v43  ;;  %v443_v4 = vshll.u32 %v442_v44, 16 }
 0xcea   : > { %v440_v2 = vpop.xlane.xlu0 %439 }
 0xceb   : > { %v441_v45 = vcvt.f32.s32 %v440_v2 }
 0xced   : > { %v444_v46 = vadd.s32 %v443_v4, %v441_v45 }
 0xcef   : > { %445 = vst [vmem:[%s199_s8] sm:$0xff] %v444_v46 }
 0xcf0   : > { %727 = shalt.err (!%p724_p0)
}
 0xcf1   : > { %574 = dma.vmem_to_hbm [thread:$0]  (%p838_p11), %s460_s14, 128, %s462_s16, %s447_s17  }
 0xcf2 PF: > { %s473_s23 = sand.u32 1, %s758_s9   ;;  %p1157_p1 = scmp.ge.s32.totalorder %s770_s12, 2 }
 0xcf3   : > { %s474_s27 = scalar_lea.sflag [#allocation4], %s473_s23 }
 0xcf4   : > { %p584_p4 = pnand %p1157_p1, %p842_p12 }
 0xcf6   : > { %p585_p7 = pneg %p584_p4 }
 0xcf8   : > { %753 = dma.done.wait (%p585_p7), %s474_s27, 128  }
 0xcf9   : > { %755 = vsyncadd (%p585_p7), %s474_s27, 4294967168  ;;  %p18_p5 = scmp.ge.s32.totalorder %s813_s15, 4   ;;  %s1158_s9 = smov %s762_s10 }
 0xcfa   : > { %s1159_s10 = smov %s766_s11  ;;  %s1160_s11 = smov %s825_s18 }
 0xcfb   : > { %s1161_s12 = smov %s813_s15  ;;  %20 = sbr.rel (!%p18_p5) target bundleno = 7 (0x7), region = 86 }
 0xd00   :  { %480 = vsyncpa [#allocation3], 1 }
 0xd01   :  { %482 = vsyncpa [#allocation3 + $0x1], 1 }
 0xd02   :  { %483 = vsyncpa [#allocation6], 1 }
 0xd03   :  { %485 = vsyncpa [#allocation6 + $0x1], 1 }
 0xd04   :  { %486 = vsyncpa [#allocation4], 1 }
 0xd05   :  { %488 = vsyncpa [#allocation4 + $0x1], 1 }

</bundles_post_ra>
